<compile_context>
chip_gen: v6e
topology: v6e:2x2x1
jax: 0.10.0
libtpu: 0.0.40
codegen_flags: <defaults>
</compile_context>

<pallas_src>
import functools

import jax
import jax.numpy as jnp
from jax.experimental import pallas as pl
from jax.experimental.pallas import tpu as pltpu

# Settings equivalent to getSettings() in the reference code.
SETTINGS = {"lrelu_alpha": 0.01, "actor_nn": 32}

# Hard cap on the batch tile: double-buffered (bt, S) state + (bt, 1) output
# tiles (both lane-padded to 128 in VMEM) stay ~< 10 MiB at bt=4096, which fits
# every generation's scoped VMEM default (v5e 16 MiB, v6e/v7x 32 MiB).
_MAX_B_TILE = 4096


def _round_up(n, m):
    return ((n + m - 1) // m) * m


def actor_kernel(x_ref, w1_ref, b1_ref, w2_ref, b2_ref, w3_ref, b3_ref, o_ref,
                 *, alpha):
    # One (bt, state_dim) tile of the batch; all weights are fully resident
    # (constant index_map => no re-DMA across grid steps).
    x = x_ref[...]

    h1 = jnp.dot(x, w1_ref[...], preferred_element_type=jnp.float32) + b1_ref[...]
    h1 = jnp.where(h1 > 0, h1, alpha * h1)

    h2 = jnp.dot(h1, w2_ref[...], preferred_element_type=jnp.float32) + b2_ref[...]
    h2 = jnp.where(h2 > 0, h2, alpha * h2)

    out = jnp.dot(h2, w3_ref[...], preferred_element_type=jnp.float32) + b3_ref[...]
    o_ref[...] = jnp.tanh(out).astype(o_ref.dtype)


def actor_forward(state, params, alpha, *, b_tile=2048):
    """state: (B, state_dim) float32.  Returns (B, 1) float32."""
    w1, b1, w2, b2, w3, b3 = params
    B, S = state.shape
    H = w1.shape[1]

    # --- batch tile selection ------------------------------------------------
    b_tile = min(b_tile, _MAX_B_TILE)
    # Keep >= 2 grid steps when possible so the "parallel" batch axis can shard
    # across v7x's 2 TensorCores; round to the 8-sublane granule.
    bt = max(8, min(b_tile, _round_up(pl.cdiv(B, 2), 8)))
    n_tiles = pl.cdiv(B, bt)
    Bp = n_tiles * bt

    # Pad only when the batch is ragged w.r.t. the tile.
    state_p = jnp.pad(state, ((0, Bp - B), (0, 0))) if Bp != B else state

    kernel = functools.partial(actor_kernel, alpha=alpha)

    # Advisory cost hint so XLA doesn't treat the call as opaque.
    flops = 2 * Bp * (S * H + H * H + H * 1)
    bytes_accessed = (
        Bp * S * 4                                                 # state in
        + Bp * 1 * 4                                               # output
        + (w1.size + b1.size + w2.size + b2.size + w3.size + b3.size) * 4
    )
    cost = pl.CostEstimate(flops=int(flops),
                           transcendentals=int(Bp),                # one tanh/row
                           bytes_accessed=int(bytes_accessed))

    rep = lambda i: (0, 0)  # weights/biases: same (full) block every step

    out = pl.pallas_call(
        kernel,
        out_shape=jax.ShapeDtypeStruct((Bp, 1), jnp.float32),
        grid_spec=pltpu.PrefetchScalarGridSpec(
            num_scalar_prefetch=0,
            grid=(n_tiles,),
            in_specs=[
                pl.BlockSpec((bt, S), lambda i: (i, 0)),           # state tile
                pl.BlockSpec(w1.shape, rep),
                pl.BlockSpec(b1.shape, rep),
                pl.BlockSpec(w2.shape, rep),
                pl.BlockSpec(b2.shape, rep),
                pl.BlockSpec(w3.shape, rep),
                pl.BlockSpec(b3.shape, rep),
            ],
            out_specs=pl.BlockSpec((bt, 1), lambda i: (i, 0)),
        ),
        compiler_params=pltpu.CompilerParams(
            dimension_semantics=("parallel",),
        ),
        cost_estimate=cost,
    )(state_p, w1, b1, w2, b2, w3, b3)

    return out[:B] if Bp != B else out


def init_actor_params(key, state_dim, actor_nn):
    """Deterministic init mimicking PyTorch nn.Linear default (uniform +-1/sqrt(fan_in))."""
    ks = jax.random.split(key, 6)

    def linear(kw, kb, fan_in, fan_out):
        bound = 1.0 / jnp.sqrt(jnp.float32(fan_in))
        # Stored as (in, out) so the kernel does x @ W.
        w = jax.random.uniform(kw, (fan_in, fan_out), jnp.float32, -bound, bound)
        b = jax.random.uniform(kb, (1, fan_out), jnp.float32, -bound, bound)
        return w, b

    w1, b1 = linear(ks[0], ks[1], state_dim, actor_nn)
    w2, b2 = linear(ks[2], ks[3], actor_nn, actor_nn)
    w3, b3 = linear(ks[4], ks[5], actor_nn, 1)
    return (w1, b1, w2, b2, w3, b3)


def reference_forward(state, params, alpha):
    """Pure-JAX reference for correctness check."""
    w1, b1, w2, b2, w3, b3 = params
    h = jax.nn.leaky_relu(state @ w1 + b1, alpha)
    h = jax.nn.leaky_relu(h @ w2 + b2, alpha)
    return jnp.tanh(h @ w3 + b3)


if __name__ == "__main__":
    key = jax.random.PRNGKey(0)
    k_param, k_state, k_big, k_even = jax.random.split(key, 4)

    state_dim = 8
    actor_nn = SETTINGS["actor_nn"]
    alpha = SETTINGS["lrelu_alpha"]

    params = init_actor_params(k_param, state_dim, actor_nn)

    # Small-batch case (typical RL inference shape): single 8-row tile.
    batch = 8
    state = jax.random.normal(k_state, (batch, state_dim), jnp.float32)
    out = jax.block_until_ready(actor_forward(state, params, alpha))
    ref = reference_forward(state, params, alpha)
    assert out.shape == (batch, 1)
    assert jnp.allclose(out, ref, atol=1e-5, rtol=1e-5)

    # Ragged batch: 2 tiles of 256 rows with remainder-row padding + slice.
    big_batch = 500
    state_big = jax.random.normal(k_big, (big_batch, state_dim), jnp.float32)
    out_big = jax.block_until_ready(actor_forward(state_big, params, alpha))
    ref_big = reference_forward(state_big, params, alpha)
    assert out_big.shape == (big_batch, 1)
    assert jnp.allclose(out_big, ref_big, atol=1e-5, rtol=1e-5)

    # Exact-multiple batch: no padding, no output slice, multi-step grid.
    even_batch = 1024
    state_even = jax.random.normal(k_even, (even_batch, state_dim), jnp.float32)
    out_even = jax.block_until_ready(actor_forward(state_even, params, alpha))
    ref_even = reference_forward(state_even, params, alpha)
    assert out_even.shape == (even_batch, 1)
    assert jnp.allclose(out_even, ref_even, atol=1e-5, rtol=1e-5)

    print("KERNEL_OK")
</pallas_src>

<mosaic_0001>
module attributes {stable_mosaic.version = 11 : i64} {
  func.func @actor_kernel(%arg0: i32, %arg1: memref<8x8xf32, #tpu.memory_space<vmem>>, %arg2: memref<8x32xf32, #tpu.memory_space<vmem>>, %arg3: memref<1x32xf32, #tpu.memory_space<vmem>>, %arg4: memref<32x32xf32, #tpu.memory_space<vmem>>, %arg5: memref<1x32xf32, #tpu.memory_space<vmem>>, %arg6: memref<32x1xf32, #tpu.memory_space<vmem>>, %arg7: memref<1x1xf32, #tpu.memory_space<vmem>>, %arg8: memref<8x1xf32, #tpu.memory_space<vmem>>) attributes {dimension_semantics = [#tpu.dimension_semantics<parallel>], iteration_bounds = array<i64: 1>, scalar_prefetch = 0 : i64, scratch_operands = 0 : i64, tpu.core_type = #tpu.core_type<tc>, window_params = [{transform_indices = @transform_0, window_bounds = array<i64: 8, 8>}, {pipeline_mode = #tpu.pipeline_mode<synchronous>, transform_indices = @transform_1, window_bounds = array<i64: 8, 32>}, {pipeline_mode = #tpu.pipeline_mode<synchronous>, transform_indices = @transform_2, window_bounds = array<i64: 1, 32>}, {pipeline_mode = #tpu.pipeline_mode<synchronous>, transform_indices = @transform_3, window_bounds = array<i64: 32, 32>}, {pipeline_mode = #tpu.pipeline_mode<synchronous>, transform_indices = @transform_4, window_bounds = array<i64: 1, 32>}, {pipeline_mode = #tpu.pipeline_mode<synchronous>, transform_indices = @transform_5, window_bounds = array<i64: 32, 1>}, {pipeline_mode = #tpu.pipeline_mode<synchronous>, transform_indices = @transform_6, window_bounds = array<i64: 1, 1>}, {transform_indices = @transform_7, window_bounds = array<i64: 8, 1>}]} {
    %c0 = arith.constant 0 : index
    %c0_0 = arith.constant 0 : index
    %0 = vector.load %arg1[%c0, %c0_0] : memref<8x8xf32, #tpu.memory_space<vmem>>, vector<8x8xf32>
    %c0_1 = arith.constant 0 : index
    %c0_2 = arith.constant 0 : index
    %1 = vector.load %arg2[%c0_1, %c0_2] : memref<8x32xf32, #tpu.memory_space<vmem>>, vector<8x32xf32>
    %cst = arith.constant dense<0.000000e+00> : vector<8x32xf32>
    %2 = tpu.matmul %0, %1, %cst {dimension_numbers = #tpu.dot_dimension_numbers<[1], [0], [0], [1], [0, 0, 1, 1], [], []>} : vector<8x8xf32>, vector<8x32xf32>, vector<8x32xf32> -> vector<8x32xf32>
    %c0_3 = arith.constant 0 : index
    %c0_4 = arith.constant 0 : index
    %3 = vector.load %arg3[%c0_3, %c0_4] : memref<1x32xf32, #tpu.memory_space<vmem>>, vector<1x32xf32>
    %4 = vector.broadcast %3 : vector<1x32xf32> to vector<8x32xf32>
    %5 = arith.addf %2, %4 : vector<8x32xf32>
    %cst_5 = arith.constant 0.000000e+00 : f32
    %6 = vector.broadcast %cst_5 : f32 to vector<8x32xf32>
    %7 = arith.cmpf ogt, %5, %6 : vector<8x32xf32>
    %cst_6 = arith.constant 0.00999999977 : f32
    %8 = vector.broadcast %cst_6 : f32 to vector<8x32xf32>
    %9 = arith.mulf %8, %5 : vector<8x32xf32>
    %10 = arith.select %7, %5, %9 : vector<8x32xi1>, vector<8x32xf32>
    %c0_7 = arith.constant 0 : index
    %c0_8 = arith.constant 0 : index
    %11 = vector.load %arg4[%c0_7, %c0_8] : memref<32x32xf32, #tpu.memory_space<vmem>>, vector<32x32xf32>
    %cst_9 = arith.constant dense<0.000000e+00> : vector<8x32xf32>
    %12 = tpu.matmul %10, %11, %cst_9 {dimension_numbers = #tpu.dot_dimension_numbers<[1], [0], [0], [1], [0, 0, 1, 1], [], []>} : vector<8x32xf32>, vector<32x32xf32>, vector<8x32xf32> -> vector<8x32xf32>
    %c0_10 = arith.constant 0 : index
    %c0_11 = arith.constant 0 : index
    %13 = vector.load %arg5[%c0_10, %c0_11] : memref<1x32xf32, #tpu.memory_space<vmem>>, vector<1x32xf32>
    %14 = vector.broadcast %13 : vector<1x32xf32> to vector<8x32xf32>
    %15 = arith.addf %12, %14 : vector<8x32xf32>
    %cst_12 = arith.constant 0.000000e+00 : f32
    %16 = vector.broadcast %cst_12 : f32 to vector<8x32xf32>
    %17 = arith.cmpf ogt, %15, %16 : vector<8x32xf32>
    %cst_13 = arith.constant 0.00999999977 : f32
    %18 = vector.broadcast %cst_13 : f32 to vector<8x32xf32>
    %19 = arith.mulf %18, %15 : vector<8x32xf32>
    %20 = arith.select %17, %15, %19 : vector<8x32xi1>, vector<8x32xf32>
    %c0_14 = arith.constant 0 : index
    %c0_15 = arith.constant 0 : index
    %21 = vector.load %arg6[%c0_14, %c0_15] : memref<32x1xf32, #tpu.memory_space<vmem>>, vector<32x1xf32>
    %cst_16 = arith.constant dense<0.000000e+00> : vector<8x1xf32>
    %22 = tpu.matmul %20, %21, %cst_16 {dimension_numbers = #tpu.dot_dimension_numbers<[1], [0], [0], [1], [0, 0, 1, 1], [], []>} : vector<8x32xf32>, vector<32x1xf32>, vector<8x1xf32> -> vector<8x1xf32>
    %c0_17 = arith.constant 0 : index
    %c0_18 = arith.constant 0 : index
    %23 = vector.load %arg7[%c0_17, %c0_18] : memref<1x1xf32, #tpu.memory_space<vmem>>, vector<1x1xf32>
    %24 = vector.broadcast %23 : vector<1x1xf32> to vector<8x1xf32>
    %25 = arith.addf %22, %24 : vector<8x1xf32>
    %26 = math.tanh %25 : vector<8x1xf32>
    %c0_19 = arith.constant 0 : index
    %c0_20 = arith.constant 0 : index
    %27 = vector.load %arg8[%c0_19, %c0_20] : memref<8x1xf32, #tpu.memory_space<vmem>>, vector<8x1xf32>
    tpu.vector_store %arg8[%c0_19, %c0_20], %26 {strides = array<i32>} : memref<8x1xf32, #tpu.memory_space<vmem>>, vector<8x1xf32>,
    return
  }
  func.func @transform_0(%arg0: i32) -> (i32, i32) {
    %c0_i32 = arith.constant 0 : i32
    %c0_i32_0 = arith.constant 0 : i32
    return %arg0, %c0_i32 : i32, i32
  }
  func.func @transform_1(%arg0: i32) -> (i32, i32) {
    %c0_i32 = arith.constant 0 : i32
    %c0_i32_0 = arith.constant 0 : i32
    %c0_i32_1 = arith.constant 0 : i32
    return %c0_i32, %c0_i32_0 : i32, i32
  }
  func.func @transform_2(%arg0: i32) -> (i32, i32) {
    %c0_i32 = arith.constant 0 : i32
    %c0_i32_0 = arith.constant 0 : i32
    %c0_i32_1 = arith.constant 0 : i32
    return %c0_i32, %c0_i32_0 : i32, i32
  }
  func.func @transform_3(%arg0: i32) -> (i32, i32) {
    %c0_i32 = arith.constant 0 : i32
    %c0_i32_0 = arith.constant 0 : i32
    %c0_i32_1 = arith.constant 0 : i32
    return %c0_i32, %c0_i32_0 : i32, i32
  }
  func.func @transform_4(%arg0: i32) -> (i32, i32) {
    %c0_i32 = arith.constant 0 : i32
    %c0_i32_0 = arith.constant 0 : i32
    %c0_i32_1 = arith.constant 0 : i32
    return %c0_i32, %c0_i32_0 : i32, i32
  }
  func.func @transform_5(%arg0: i32) -> (i32, i32) {
    %c0_i32 = arith.constant 0 : i32
    %c0_i32_0 = arith.constant 0 : i32
    %c0_i32_1 = arith.constant 0 : i32
    return %c0_i32, %c0_i32_0 : i32, i32
  }
  func.func @transform_6(%arg0: i32) -> (i32, i32) {
    %c0_i32 = arith.constant 0 : i32
    %c0_i32_0 = arith.constant 0 : i32
    %c0_i32_1 = arith.constant 0 : i32
    return %c0_i32, %c0_i32_0 : i32, i32
  }
  func.func @transform_7(%arg0: i32) -> (i32, i32) {
    %c0_i32 = arith.constant 0 : i32
    %c0_i32_0 = arith.constant 0 : i32
    return %arg0, %c0_i32 : i32, i32
  }
}

</mosaic_0001>

<bundles_post_ra>
// kernel: tpu_custom_call.1
= control target key start
LH: loop header
LB: loop body
LE: loop exit
PB: predicated region body
PF: predicated region fallthrough
CT: control target
= control target key end

     0   :  { %s502_s0 = inlined_call_operand.vmem [shape: f32[8,8], index: 0, kind: input, shape index: {}]   ;;  %s503_s1 = inlined_call_operand.hbm [shape: f32[8,32], index: 1, kind: input, shape index: {}]   ;;  %s504_s2 = inlined_call_operand.hbm [shape: f32[1,32], index: 2, kind: input, shape index: {}]   ;;  %s505_s3 = inlined_call_operand.vmem [shape: f32[32,32], index: 3, kind: input, shape index: {}]   ;;  %s506_s4 = inlined_call_operand.vmem [shape: f32[1,32], index: 4, kind: input, shape index: {}]   ;;  %s507_s5 = inlined_call_operand.vmem [shape: f32[32,1], index: 5, kind: input, shape index: {}]   ;;  %s508_s6 = inlined_call_operand.<no memory space> [shape: f32[1,1], index: 6, kind: input, shape index: {}]   ;;  %s509_s7 = inlined_call_operand.vmem [shape: f32[8,1], index: 7, kind: output, shape index: {}]  }
   0x1   :  { %v12_v0 = vstv %s508_s6 }
   0x2   :  { %13 = vst [vmem:[#allocation2] sm:$0x1] %v12_v0 }
   0x3   :  { %14 = vsyncpa [#allocation4], 0 }
   0x4   :  { %15 = vsyncpa [#allocation6], 0  ;;  %s414_s26 = smov [#allocation3]   ;;  %s415_s28 = smov [#allocation5]  }
   0x5   :  { %s24_s27 = sshll.u32 %s414_s26, 4  ;;  %s34_s29 = sshll.u32 %s415_s28, 4  ;;  %s25_s27 = int_to_ptr.vmem [resolvable:$true] %s24_s27  ;;  %s35_s29 = int_to_ptr.vmem [resolvable:$true] %s34_s29 }
   0x6   :  { %s378_s30 = scalar_lea.vmem %s25_s27, 128  ;;  %p383_p1 = scmp.lt.s32.totalorder %s25_s27, %s25_s27 }
   0x7   :  { %p379_p0 = scmp.ne.s32.totalorder %s25_s27, %s378_s30  ;;  %p384_p2 = scmp.lt.s32.totalorder %s378_s30, %s378_s30 }
   0x9   :  { %p385_p3 = por %p384_p2, %p383_p1 }
   0xb   :  { %p386_p4 = pnand %p385_p3, %p379_p0 }
   0xd   :  { %389 = shalt.err (!%p386_p4)
}
   0xe   :  { %27 = dma.hbm_to_vmem [thread:$0]  %s503_s1, 128, %s25_s27, [#allocation4]  }
   0xf   :  { %s398_s6 = scalar_lea.vmem %s35_s29, 16  ;;  %s402_s10 = scalar_lea.vmem %s35_s29, 32 }
  0x10   :  { %p399_p5 = scmp.ne.s32.totalorder %s35_s29, %s398_s6  ;;  %p403_p6 = scmp.lt.s32.totalorder %s35_s29, %s35_s29 }
  0x11   :  { %p404_p7 = scmp.lt.s32.totalorder %s402_s10, %s398_s6 }
  0x13   :  { %p405_p8 = por %p404_p7, %p403_p6 }
  0x15   :  { %p406_p9 = pnand %p405_p8, %p399_p5 }
  0x17   :  { %409 = shalt.err (!%p406_p9)
}
  0x18   :  { %37 = dma.hbm_to_vmem [thread:$0]  %s504_s2, 16, %s35_s29, [#allocation6]  }
  0x19   :  { %410 = dma.done.wait [#allocation4], 128  }
  0x1a   :  { %411 = vsyncadd [#allocation4], 4294967168 }
  0x1b   :  { %412 = dma.done.wait [#allocation6], 16  }
  0x1c   :  { %413 = vsyncadd [#allocation6], 4294967280  ;;  %v416_v1 = vmov 0.0   ;;  %vm417_vm0 = vmmov 0   ;;  %vm61_vm1 = vcmask 64512   ;;  %v53_v2 = vld [vmem:[#allocation3] sm:$0xff] }
  0x1d   :  { %337 = vmatprep.subr.mxu0 %v416_v1  ;;  %339 = vmatprep.mubr.msk.f32.mxu0 %vm417_vm0, %v416_v1  ;;  %v52_v3 = vld [vmem:[%s502_s0] sm:$0xff]  ;;  %v141_v4 = vld [vmem:[%s505_s3 + $0x18] sm:$0xff]  ;;  %v140_v5 = vld [vmem:[%s505_s3 + $0x10] sm:$0xff]  ;;  %vm149_vm3 = vcmask 261120   ;;  %vm311_vm5 = vcmask 7168  }
  0x1e   :  { %342 = vmatprep.subr.mxu1 %v416_v1  ;;  %350 = vmatprep.mubr.msk.f32.mxu1 %vm417_vm0, %v416_v1  ;;  %v139_v6 = vld [vmem:[%s505_s3 + $0x8] sm:$0xff]  ;;  %v138_v7 = vld [vmem:[%s505_s3] sm:$0xff]  ;;  %v229_v8 = vld [vmem:[%s507_s5 + $0x18] sm:$0xff] }
  0x1f   :  { %338 = vmatpush3.msra.mxu0 %v53_v2  ;;  %343 = vmatpush3.msra.mxu1 %v141_v4  ;;  %v319_v9 = vld [vmem:[#allocation5] ss:$0 sm:$0xff]  ;;  %v228_v15 = vld [vmem:[%s507_s5 + $0x10] sm:$0xff]  ;;  %v226_v17 = vld [vmem:[%s507_s5] sm:$0xff] }
  0x20   :  { %340 = vmatmul.mubr.msk.f32.vlgmr.msra.gmra.mxu0 %vm61_vm1, %v52_v3  ;;  %344 = vmatprep.subr.mxu1 %v416_v1  ;;  %v227_v16 = vld [vmem:[%s507_s5 + $0x8] sm:$0xff]  ;;  %v321_v18 = vld [vmem:[%s506_s4] ss:$0 sm:$0xff] }
  0x21   :  { %353 = vmatprep.subr.mxu0 %v416_v1  ;;  %361 = vmatprep.mubr.msk.f32.mxu0 %vm417_vm0, %v416_v1  ;;  %v323_v24 = vld [vmem:[#allocation2] ss:$0 sm:$0xff] }
  0x22   :  { %345 = vmatpush3.msra.mxu1 %v140_v5  ;;  %354 = vmatpush3.msra.mxu0 %v229_v8 }
  0x23   :  { %346 = vmatprep.subr.mxu1 %v416_v1  ;;  %355 = vmatprep.subr.mxu0 %v416_v1 }
  0x24   :  { %347 = vmatpush3.msra.mxu1 %v139_v6  ;;  %356 = vmatpush3.msra.mxu0 %v228_v15 }
  0x25   :  { %348 = vmatprep.subr.mxu1 %v416_v1  ;;  %357 = vmatprep.subr.mxu0 %v416_v1 }
  0x26   :  { %349 = vmatpush3.msra.mxu1 %v138_v7  ;;  %358 = vmatpush3.msra.mxu0 %v227_v16 }
  0x27   :  { %359 = vmatprep.subr.mxu0 %v416_v1 }
  0x28   :  { %360 = vmatpush3.msra.mxu0 %v226_v17 }
  0xe0   :  { %v131_v10 = vpop.f32.mrf.mxu0 }
  0xe1   :  { %v132_v11 = vadd.f32 %v319_v9, %v131_v10 }
  0xe2   :  { %v341_v12 = vpop.f32.mrf.mxu0 }
  0xe3   :  { %vm135_vm2 = vcmp.gt.f32.partialorder %v132_v11, 0.0  ;;  %v136_v13 = vmul.f32 0.01, %v132_v11 }
  0xe5   :  { %v137_v14 = vsel %vm135_vm2, %v132_v11, %v136_v13 }
  0xe6   :  { %351 = vmatmul.mubr.msk.f32.vlgmr.msra.gmra.mxu1 %vm149_vm3, %v137_v14 }
 0x1a6   :  { %v219_v19 = vpop.f32.mrf.mxu1 }
 0x1a7   :  { %v220_v20 = vadd.f32 %v321_v18, %v219_v19 }
 0x1a8   :  { %v352_v21 = vpop.f32.mrf.mxu1 }
 0x1a9   :  { %vm223_vm4 = vcmp.gt.f32.partialorder %v220_v20, 0.0  ;;  %v224_v22 = vmul.f32 0.01, %v220_v20 }
 0x1ab   :  { %v225_v23 = vsel %vm223_vm4, %v220_v20, %v224_v22 }
 0x1ac   :  { %362 = vmatmul.mubr.msk.f32.vlgmr.msra.gmra.mxu0 %vm149_vm3, %v225_v23 }
 0x26c   :  { %v306_v25 = vpop.f32.mrf.mxu0 }
 0x26d   :  { %v307_v26 = vadd.f32 %v323_v24, %v306_v25 }
 0x26e   :  { %v363_v27 = vpop.f32.mrf.mxu0 }
 0x26f   :  { %368 = vtanh.f32 %v307_v26 }
 0x27c   :  { %v369_v28 = vpop.eup %368 }
 0x27d   :  { %312 = vst.msk [vmem:[%s509_s7] sm:$0xff] %vm311_vm5, %v369_v28 }
 0x27e   :  { %317 = vsyncpa [#allocation4], 1 }
 0x27f   :  { %318 = vsyncpa [#allocation6], 1 }

</bundles_post_ra>
